<compile_context>
chip_gen: v7x
topology: tpu7x:2x2x1
jax: 0.10.0
libtpu: 0.0.40
codegen_flags: <defaults>
</compile_context>

<pallas_src>
import jax
import jax.numpy as jnp
from jax.experimental import pallas as pl
from jax.experimental.pallas import tpu as pltpu


# ----------------------------------------------------------------------------- kernels
def _augment_kernel_noise(g_ref, x_ref, noise_ref, rowm_ref, featm_ref, o_ref):
    """y = (x + g[b] * noise) * (row_mult * feat_mult), one (1, TS, H) tile."""
    b = pl.program_id(0)
    g = g_ref[b]                                        # word_noise * gate_b  (f32 scalar)
    m = rowm_ref[...] * featm_ref[...]                  # (1,TS,1)*(1,1,H) -> (1,TS,H)
    x = x_ref[...].astype(jnp.float32)
    n = noise_ref[...].astype(jnp.float32)
    o_ref[...] = ((x + g * n) * m).astype(o_ref.dtype)


def _augment_kernel_nonoise(x_ref, rowm_ref, featm_ref, o_ref):
    """y = x * (row_mult * feat_mult), one (1, TS, H) tile (word_noise == 0)."""
    m = rowm_ref[...] * featm_ref[...]                  # (1,TS,1)*(1,1,H) -> (1,TS,H)
    o_ref[...] = (x_ref[...].astype(jnp.float32) * m).astype(o_ref.dtype)


# ----------------------------------------------------------------------------- helpers
def _pick_row_tile(S, H, itemsize, n_big_arrays):
    """Rows per tile: biggest multiple of 8 keeping double-buffered big tiles <= ~8 MiB."""
    budget = 8 * 1024 * 1024
    rows = budget // max(1, H * itemsize * 2 * n_big_arrays)
    if rows >= S:
        return S
    return max(8, int(rows) // 8 * 8)


# ----------------------------------------------------------------------------- wrapper
def augment(x, mask, seed, *, word_cutoff=0.0, feature_cutoff=0.0,
            span_cutoff=0.0, word_noise=0.0, training=True, on=True):
    """JAX/Pallas equivalent of Augment.forward(x, mask) for x of shape [B, S, H]."""
    if span_cutoff > 0:
        raise NotImplementedError("span_cutoff is not implemented (matches the reference).")

    B, S, H = x.shape
    mask = jnp.asarray(mask)
    if mask.ndim == 2:
        mask = mask[:, :, None]
    mask_f32 = mask.astype(jnp.float32)                 # [B, S, 1]

    active = (training and on and
              (word_cutoff > 0 or feature_cutoff > 0 or word_noise > 0))
    if not active:
        # Plain x * mask — no kernel launch, lets XLA fuse it with neighbors.
        return (x.astype(jnp.float32) * mask_f32).astype(x.dtype)

    key = jax.random.PRNGKey(seed)
    k_gate, k_noise, k_word, k_feat = jax.random.split(key, 4)

    # Row multiplier: word-cutoff mask fused with the padding mask  ([B, S, 1], f32).
    rowm = mask_f32
    if word_cutoff > 0:
        wm = (jax.random.uniform(k_word, (B, S)) > word_cutoff).astype(jnp.float32)
        rowm = rowm * wm[:, :, None]

    # Feature-cutoff multiplier ([B, 1, H], f32).
    if feature_cutoff > 0:
        featm = (jax.random.uniform(k_feat, (B, H)) > feature_cutoff
                 ).astype(jnp.float32)[:, None, :]
    else:
        featm = jnp.ones((B, 1, H), jnp.float32)

    has_noise = word_noise > 0
    if has_noise:
        # Per-batch gate in {0,1}; only a (B,) draw instead of a full x-sized tensor.
        gate = jnp.round(jax.random.uniform(k_gate, (B,), dtype=jnp.float32))
        g = (word_noise * gate).astype(jnp.float32)                        # [B]
        noise_dtype = x.dtype if jnp.issubdtype(x.dtype, jnp.floating) else jnp.float32
        noise = jax.random.uniform(k_noise, (B, S, H), dtype=noise_dtype)  # [B, S, H]

    itemsize = jnp.dtype(x.dtype).itemsize
    n_big = 3 if has_noise else 2                       # x, (noise), out
    ts = _pick_row_tile(S, H, itemsize, n_big)
    grid = (B, pl.cdiv(S, ts))

    x_spec = pl.BlockSpec((1, ts, H), lambda b, s: (b, s, 0))
    rowm_spec = pl.BlockSpec((1, ts, 1), lambda b, s: (b, s, 0))
    featm_spec = pl.BlockSpec((1, 1, H), lambda b, s: (b, 0, 0))
    out_spec = pl.BlockSpec((1, ts, H), lambda b, s: (b, s, 0))

    cparams = pltpu.CompilerParams(
        dimension_semantics=("parallel", "parallel"))   # megacore sharding on v7x

    if has_noise:
        return pl.pallas_call(
            _augment_kernel_noise,
            out_shape=jax.ShapeDtypeStruct(x.shape, x.dtype),
            grid=grid,
            in_specs=[
                pl.BlockSpec(memory_space=pltpu.MemorySpace.SMEM),   # g  [B] scalars
                x_spec,                                              # x      [B, S, H]
                x_spec,                                              # noise  [B, S, H]
                rowm_spec,                                           # rowm   [B, S, 1]
                featm_spec,                                          # featm  [B, 1, H]
            ],
            out_specs=out_spec,
            compiler_params=cparams,
        )(g, x, noise, rowm, featm)

    return pl.pallas_call(
        _augment_kernel_nonoise,
        out_shape=jax.ShapeDtypeStruct(x.shape, x.dtype),
        grid=grid,
        in_specs=[x_spec, rowm_spec, featm_spec],
        out_specs=out_spec,
        compiler_params=cparams,
    )(x, rowm, featm)


# ----------------------------------------------------------------------------- demo
if __name__ == "__main__":
    B, S, H = 2, 8, 32
    key = jax.random.PRNGKey(0)
    kx, km = jax.random.split(key)

    x = jax.random.normal(kx, (B, S, H), dtype=jnp.float32)
    # Padding-style mask: 1.0 for valid tokens, 0.0 for padded ones.
    mask = (jax.random.uniform(km, (B, S, 1)) < 0.8).astype(jnp.float32)

    # Full augmentation path (noise + word cutoff + feature cutoff + pad mask).
    y = augment(
        x, mask, seed=1234,
        word_cutoff=0.1, feature_cutoff=0.1, word_noise=0.1,
        training=True, on=True,
    )
    y = jax.block_until_ready(y)
    assert y.shape == (B, S, H) and y.dtype == jnp.float32
    assert bool(jnp.all(jnp.isfinite(y)))
    # Padded positions (mask == 0) must be exactly zero in the output.
    assert bool(jnp.all(jnp.where(mask == 0.0, y, 0.0) == 0.0))

    # No-noise active path (exercises the second kernel variant).
    y2 = jax.block_until_ready(
        augment(x, mask, seed=7, word_cutoff=0.2, feature_cutoff=0.0,
                word_noise=0.0, training=True, on=True))
    assert y2.shape == (B, S, H)
    assert bool(jnp.all(jnp.where(mask == 0.0, y2, 0.0) == 0.0))

    # Eval / off path reduces to plain x * mask.
    y_eval = jax.block_until_ready(
        augment(x, mask, seed=1234, word_cutoff=0.1, feature_cutoff=0.1,
                word_noise=0.1, training=False))
    assert bool(jnp.allclose(y_eval, x * mask))

    print("KERNEL_OK")
</pallas_src>

<mosaic_0001>
module attributes {stable_mosaic.version = 11 : i64} {
  func.func @_augment_kernel_noise(%arg0: i32, %arg1: i32, %arg2: memref<2xf32, #tpu.memory_space<smem>>, %arg3: memref<1x8x32xf32, #tpu.memory_space<vmem>>, %arg4: memref<1x8x32xf32, #tpu.memory_space<vmem>>, %arg5: memref<1x8x1xf32, #tpu.memory_space<vmem>>, %arg6: memref<1x1x32xf32, #tpu.memory_space<vmem>>, %arg7: memref<1x8x32xf32, #tpu.memory_space<vmem>>) attributes {dimension_semantics = [#tpu.dimension_semantics<parallel>, #tpu.dimension_semantics<parallel>], iteration_bounds = array<i64: 2, 1>, scalar_prefetch = 0 : i64, scratch_operands = 0 : i64, tpu.core_type = #tpu.core_type<tc>, window_params = [{transform_indices = @transform_0, window_bounds = array<i64: 2>}, {transform_indices = @transform_1, window_bounds = array<i64: 1, 8, 32>}, {transform_indices = @transform_2, window_bounds = array<i64: 1, 8, 32>}, {transform_indices = @transform_3, window_bounds = array<i64: 1, 8, 1>}, {transform_indices = @transform_4, window_bounds = array<i64: 1, 1, 32>}, {transform_indices = @transform_5, window_bounds = array<i64: 1, 8, 32>}]} {
    %0 = arith.index_cast %arg0 : i32 to index
    %1 = memref.load %arg2[%0] : memref<2xf32, #tpu.memory_space<smem>>
    %c0 = arith.constant 0 : index
    %c0_0 = arith.constant 0 : index
    %c0_1 = arith.constant 0 : index
    %2 = vector.load %arg5[%c0, %c0_0, %c0_1] : memref<1x8x1xf32, #tpu.memory_space<vmem>>, vector<1x8x1xf32>
    %c0_2 = arith.constant 0 : index
    %c0_3 = arith.constant 0 : index
    %c0_4 = arith.constant 0 : index
    %3 = vector.load %arg6[%c0_2, %c0_3, %c0_4] : memref<1x1x32xf32, #tpu.memory_space<vmem>>, vector<1x1x32xf32>
    %4 = vector.broadcast %2 : vector<1x8x1xf32> to vector<1x8x32xf32>
    %5 = vector.broadcast %3 : vector<1x1x32xf32> to vector<1x8x32xf32>
    %6 = arith.mulf %4, %5 : vector<1x8x32xf32>
    %c0_5 = arith.constant 0 : index
    %c0_6 = arith.constant 0 : index
    %c0_7 = arith.constant 0 : index
    %7 = vector.load %arg3[%c0_5, %c0_6, %c0_7] : memref<1x8x32xf32, #tpu.memory_space<vmem>>, vector<1x8x32xf32>
    %c0_8 = arith.constant 0 : index
    %c0_9 = arith.constant 0 : index
    %c0_10 = arith.constant 0 : index
    %8 = vector.load %arg4[%c0_8, %c0_9, %c0_10] : memref<1x8x32xf32, #tpu.memory_space<vmem>>, vector<1x8x32xf32>
    %9 = vector.broadcast %1 : f32 to vector<1x8x32xf32>
    %10 = arith.mulf %9, %8 : vector<1x8x32xf32>
    %11 = arith.addf %7, %10 : vector<1x8x32xf32>
    %12 = arith.mulf %11, %6 : vector<1x8x32xf32>
    %c0_11 = arith.constant 0 : index
    %c0_12 = arith.constant 0 : index
    %c0_13 = arith.constant 0 : index
    %13 = vector.load %arg7[%c0_11, %c0_12, %c0_13] : memref<1x8x32xf32, #tpu.memory_space<vmem>>, vector<1x8x32xf32>
    tpu.vector_store %arg7[%c0_11, %c0_12, %c0_13], %12 {strides = array<i32>} : memref<1x8x32xf32, #tpu.memory_space<vmem>>, vector<1x8x32xf32>,
    return
  }
  func.func @transform_0(%arg0: i32, %arg1: i32) -> i32 {
    %c0_i32 = arith.constant 0 : i32
    %c0_i32_0 = arith.constant 0 : i32
    return %c0_i32 : i32
  }
  func.func @transform_1(%arg0: i32, %arg1: i32) -> (i32, i32, i32) {
    %c0_i32 = arith.constant 0 : i32
    %c0_i32_0 = arith.constant 0 : i32
    return %arg0, %arg1, %c0_i32 : i32, i32, i32
  }
  func.func @transform_2(%arg0: i32, %arg1: i32) -> (i32, i32, i32) {
    %c0_i32 = arith.constant 0 : i32
    %c0_i32_0 = arith.constant 0 : i32
    return %arg0, %arg1, %c0_i32 : i32, i32, i32
  }
  func.func @transform_3(%arg0: i32, %arg1: i32) -> (i32, i32, i32) {
    %c0_i32 = arith.constant 0 : i32
    %c0_i32_0 = arith.constant 0 : i32
    return %arg0, %arg1, %c0_i32 : i32, i32, i32
  }
  func.func @transform_4(%arg0: i32, %arg1: i32) -> (i32, i32, i32) {
    %c0_i32 = arith.constant 0 : i32
    %c0_i32_0 = arith.constant 0 : i32
    %c0_i32_1 = arith.constant 0 : i32
    return %arg0, %c0_i32, %c0_i32_0 : i32, i32, i32
  }
  func.func @transform_5(%arg0: i32, %arg1: i32) -> (i32, i32, i32) {
    %c0_i32 = arith.constant 0 : i32
    %c0_i32_0 = arith.constant 0 : i32
    return %arg0, %arg1, %c0_i32 : i32, i32, i32
  }
}

</mosaic_0001>

<bundles_post_ra>
// kernel: tpu_custom_call.1
= control target key start
LH: loop header
LB: loop body
LE: loop exit
PB: predicated region body
PF: predicated region fallthrough
CT: control target
= control target key end

     0   :  { %10 = vsyncpa [#allocation5], 0  ;;  %s981_s0 = inlined_call_operand.vmem [shape: f32[2], index: 0, kind: input, shape index: {}]   ;;  %s982_s1 = inlined_call_operand.vmem [shape: f32[2,8,32], index: 1, kind: input, shape index: {}]   ;;  %s983_s2 = inlined_call_operand.hbm [shape: f32[2,8,32], index: 2, kind: input, shape index: {}]   ;;  %s984_s3 = inlined_call_operand.vmem [shape: f32[2,8,1], index: 3, kind: input, shape index: {}]   ;;  %s985_s4 = inlined_call_operand.vmem [shape: f32[2,1,32], index: 4, kind: input, shape index: {}]   ;;  %s986_s5 = inlined_call_operand.hbm [shape: f32[2,8,32], index: 5, kind: output, shape index: {}]  }
   0x1   :  { %11 = vsyncpa [#allocation3], 0 }
   0x2   :  { %13 = vsyncpa [#allocation3 + $0x1], 0 }
   0x3   :  { %14 = vsyncpa [#allocation4], 0 }
   0x4   :  { %16 = vsyncpa [#allocation4 + $0x1], 0  ;;  %s770_s18 = smov 0   ;;  %s772_s19 = smov 0  }
   0x5   :  { %s774_s20 = smov 0   ;;  %s776_s21 = smov 0  }
   0x6   :  { %s778_s22 = smov 0   ;;  %s780_s23 = smov 0  }
   0x7 LB: > { %s510_s24 = sadd.s32 4294967295, %s734_s23   ;;  %s511_s25 = sadd.s32 4294967294, %s734_s23   ;;  %s734_s23 = sphi %s780_s23, %s22_s23   ;;  %s730_s22 = sphi %s778_s22, %s1008_s22   ;;  %s726_s21 = sphi %s776_s21, %s1007_s21   ;;  %s722_s20 = sphi %s774_s20, %s1006_s20   ;;  %s718_s19 = sphi %s772_s19, %s1005_s19   ;;  %s714_s18 = sphi %s770_s18, %s1004_s18  }
   0x8   : > { %p105_p0 = scmp.ne.s32.totalorder %s718_s19, %s714_s18  ;;  %p804_p1 = scmp.eq.s32.totalorder %s510_s24, 0 }
   0x9   : > { %p808_p2 = scmp.eq.s32.totalorder %s510_s24, 1  ;;  %p191_p3 = scmp.eq.s32.totalorder %s511_s25, 1 }
   0xa   : > { %s991_s26 = scalar_select %p804_p1, 1, 0 }
   0xb   : > { %p814_p4 = por %p804_p1, %p105_p0  ;;  %p512_p5 = scmp.ge.s32.totalorder %s734_s23, 1 }
   0xc   : > { %p819_p6 = por %p191_p3, %p105_p0  ;;  %p198_p7 = scmp.lt.s32.totalorder %s734_s23, 3 }
   0xd   : > { %s993_s28 = scalar_select %p814_p4, 1, 0 }
   0xe   : > { %s994_s29 = scalar_select %p819_p6, 1, 0 }
   0xf   : > { %s211_s7 = sshll.u32 %s981_s0, 4  ;;  %p827_p8 = pnand %p512_p5, %p198_p7  ;;  %s212_s7 = int_to_ptr.vmem [resolvable:$true] %s211_s7 }
  0x10   : > { %s34_s10 = sadd.s32 1, %s730_s22  ;;  %s92_s11 = sadd.s32 1, %s722_s20 }
  0x11   : > { %p536_p10 = pneg %p827_p8  ;;  %p36_p12 = scmp.ge.s32.totalorder %s34_s10, 2 }
  0x12   : > { %s603_s12 = scalar_lea.vmem %s212_s7, 16  ;;  %p611_p7 = scmp.lt.s32.totalorder %s212_s7, %s212_s7 }
  0x13   : > { %p836_p11 = pnand %p536_p10, %p804_p1  ;;  %p604_p13 = scmp.ne.s32.totalorder %s212_s7, %s603_s12 }
  0x14   : > { %p612_p6 = scmp.lt.s32.totalorder %s603_s12, %s603_s12 }
  0x15   : > { %p605_p0 = pneg %p836_p11 }
  0x16   : > { %p613_p9 = por %p612_p6, %p611_p7 }
  0x17   : > { %p606_p3 = pnand %p605_p0, %p604_p13 }
  0x19   : > { %p607_p5 = pneg %p606_p3 }
  0x1b   : > { %p614_p4 = pnand %p613_p9, %p607_p5 }
  0x1d   : > { %617 = shalt.err (!%p614_p4)
}
  0x1e   : > { %s736_s13 = smov [#allocation2]   ;;  %s1010_s10 = smov (%p36_p12, %s34_s10), 0 }
  0x1f   : > { %539 = dma.vmem_to_smem (!%p836_p11), %s212_s7, 16, %s736_s13, [#allocation5]  }
  0x20   : > { %p99_p10 = scmp.ne.s32.totalorder %s722_s20, %s718_s19  ;;  %p100_p6 = scmp.eq.s32.totalorder %s734_s23, 0 }
  0x21   : > { %s87_s14 = ssub.s32 %s730_s22, %s1010_s10  ;;  %p549_p4 = scmp.lt.s32.totalorder %s734_s23, 2 }
  0x22   : > { %p90_p9 = scmp.eq.s32.totalorder %s87_s14, 0  ;;  %p101_p13 = por %p100_p6, %p99_p10 }
  0x23   : > { %p856_p0 = por %p808_p2, %p99_p10  ;;  %s232_s16 = sand.u32 1, %s722_s20  }
  0x24   : > { %s862_s17 = scalar_select %p90_p9, %s722_s20, %s92_s11  }
  0x25   : > { %s997_s15 = scalar_select %p856_p0, 1, 0 }
  0x26   : > { %s515_s24 = sshll.u32 %s232_s16, 3  ;;  %s516_s25 = sshll.u32 %s730_s22, 7 }
  0x27   : > { %s868_s7 = scalar_lea.hbm %s983_s2, %s516_s25  ;;  %s236_s9 = scalar_lea.vmem [#allocation6], %s515_s24 }
  0x28   : > { %s244_s27 = sshll.u32 %s236_s9, 4  ;;  %p872_p2 = pnand %p549_p4, %p101_p13  ;;  %s870_s27 = int_to_ptr.vmem [resolvable:$true] %s244_s27 }
  0x29   : > { %s233_s11 = scalar_lea.sflag [#allocation3], %s232_s16  ;;  %s618_s13 = scalar_lea.hbm %s868_s7, 128 }
  0x2a   : > { %p619_p11 = scmp.ne.s32.totalorder %s868_s7, %s618_s13  ;;  %p620_p12 = pneg %p872_p2 }
  0x2b   : > { %s623_s25 = scalar_lea.hbm %s983_s2, 256  ;;  %p624_p7 = scmp.lt.u32.totalorder %s868_s7, %s983_s2 }
  0x2c   : > { %p621_p3 = pnand %p620_p12, %p619_p11  ;;  %p625_p10 = scmp.lt.u32.totalorder %s623_s25, %s618_s13 }
  0x2d   : > { %p627_p4 = scmp.lt.u32.totalorder %s618_s13, %s868_s7 }
  0x2e   : > { %p622_p5 = pneg %p621_p3  ;;  %p626_p6 = por %p625_p10, %p624_p7 }
  0x30   : > { %p628_p9 = por %p627_p4, %p626_p6 }
  0x32   : > { %p629_p13 = pnand %p628_p9, %p622_p5 }
  0x34   : > { %632 = shalt.err (!%p629_p13)
}
  0x35   : > { %s633_s16 = scalar_lea.vmem %s870_s27, 128  ;;  %s737_s9 = smov [#allocation6]  }
  0x36   : > { %p634_p11 = scmp.ne.s32.totalorder %s870_s27, %s633_s16  ;;  %s638_s14 = sshll.u32 %s737_s9, 4  ;;  %s639_s14 = int_to_ptr.vmem [resolvable:$false] %s638_s14 }
  0x37   : > { %s640_s24 = scalar_lea.vmem %s639_s14, 256  ;;  %p641_p1 = scmp.lt.s32.totalorder %s870_s27, %s639_s14 }
  0x38   : > { %p636_p3 = pnand %p634_p11, %p620_p12  ;;  %p642_p7 = scmp.lt.s32.totalorder %s640_s24, %s633_s16 }
  0x3a   : > { %p637_p0 = pneg %p636_p3  ;;  %p643_p10 = por %p642_p7, %p641_p1 }
  0x3c   : > { %p644_p6 = pnand %p643_p10, %p637_p0 }
  0x3e   : > { %647 = shalt.err (!%p644_p6)
}
  0x3f   : > { %543 = dma.hbm_to_vmem [thread:$0]  (!%p872_p2), %s868_s7, 128, %s870_s27, %s233_s11  }
  0x40   : > { %269 = sbr.rel (%p827_p8) target bundleno = 231 (0xe7), region = 40  ;;  %p999_p12 = scmp.ne.s32.totalorder (!%p827_p8), %s991_s26, 0 }
  0x47   : > { %701 = dma.done.wait (%p999_p12), [#allocation5], 16  }
  0x48   : > { %703 = vsyncadd (%p999_p12), [#allocation5], 4294967280  ;;  %s908_s13 = sand.u32 1, %s718_s19   ;;  %p1000_p1 = scmp.ne.s32.totalorder %s993_s28, 0 }
  0x49   : > { %s519_s25 = sshll.u32 %s908_s13, 3  ;;  %s276_s12 = scalar_lea.sflag [#allocation3], %s908_s13 }
  0x4a   : > { %s279_s30 = scalar_lea.vmem [#allocation6], %s519_s25 }
  0x4b   : > { %705 = dma.done.wait (%p1000_p1), %s276_s12, 128  }
  0x4c   : > { %707 = vsyncadd (%p1000_p1), %s276_s12, 4294967168 }
  0x4d   : > { %284 = sfence }
  0x4e   : > { %p324_p8 = scmp.lt.s32.totalorder %s726_s21, 1  ;;  %v738_v0 = vmov 0   ;;  %s341_s6 = sld [smem:[#allocation2 + %s726_s21]]  ;;  %v357_v2 = vld [vmem:[%s279_s30] sm:$0xff]  ;;  %vm362_vm0 = vcmask 261120  }
  0x4f   : > { %602 = vset.pattern.permute.xlu0 %v738_v0  ;;  %s525_s7 = sshll.u32 %s726_s21, 7  ;;  %s323_s27 = scalar_lea.vmem [#allocation7], %s519_s25 }
  0x50   : > { %s325_s26 = scalar_select %p324_p8, %s726_s21, 1 }
  0x51   : > { %p1001_p2 = scmp.ne.s32.totalorder %s997_s15, 0  ;;  %s739_s21 = smov [#allocation7]  }
  0x52   : > { %s521_s8 = sshll.u32 %s325_s26, 3  ;;  %s340_s12 = scalar_lea.vmem %s985_s4, %s325_s26 }
  0x53   : > { %s337_s11 = scalar_lea.vmem %s984_s3, %s521_s8  ;;  %s330_s9 = scalar_lea.vmem %s982_s1, %s521_s8  ;;  %v523_v6 = vld [vmem:[%s340_s12] ss:$0 sm:$0xff] }
  0x54   : > { %v342_v1 = vld [vmem:[%s337_s11] sm:$0xff]  ;;  %v358_v3 = vstv %s341_s6  ;;  %s379_s11 = sshll.u32 %s323_s27, 4  ;;  %s932_s8 = scalar_lea.hbm %s986_s5, %s525_s7  ;;  %s934_s11 = int_to_ptr.vmem [resolvable:$true] %s379_s11 }
  0x55   : > { %346 = vperm.xlu0 %602, %v342_v1   ;;  %v359_v4 = vmul.f32 %v358_v3, %v357_v2  ;;  %v356_v5 = vld [vmem:[%s330_s9] sm:$0xff]  ;;  %s365_s26 = scalar_lea.sflag [#allocation4], %s908_s13  ;;  %s648_s28 = scalar_lea.vmem %s934_s11, 128 }
  0x56   : > { %p649_p0 = scmp.ne.s32.totalorder %s934_s11, %s648_s28  ;;  %s652_s25 = sshll.u32 %s739_s21, 4  ;;  %s653_s25 = int_to_ptr.vmem [resolvable:$false] %s652_s25 }
  0x57   : > { %v360_v7 = vadd.f32 %v359_v4, %v356_v5  ;;  %s654_s16 = scalar_lea.vmem %s653_s25, 256  ;;  %p655_p9 = scmp.lt.s32.totalorder %s934_s11, %s653_s25 }
  0x58   : > { %p650_p5 = pnand %p649_p0, %p1001_p2  ;;  %p656_p13 = scmp.lt.s32.totalorder %s654_s16, %s648_s28 }
  0x5a   : > { %p651_p4 = pneg %p650_p5  ;;  %p657_p11 = por %p656_p13, %p655_p9 }
  0x5c   : > { %p658_p3 = pnand %p657_p11, %p651_p4 }
  0xd4   : > { %v347_v8 = vpop.permute.xlu0 %346 }
  0xd5   : > { %v355_v9 = vmul.f32 %v523_v6, %v347_v8 }
  0xd7   : > { %v361_v10 = vmul.f32 %v360_v7, %v355_v9 }
  0xd9   : > { %363 = vst.msk [vmem:[%s323_s27] sm:$0xff] %vm362_vm0, %v361_v10 }
  0xda   : > { %661 = shalt.err (!%p658_p3)
}
  0xdb   : > { %s662_s13 = scalar_lea.hbm %s932_s8, 128  ;;  %s666_s24 = scalar_lea.hbm %s986_s5, 256 }
  0xdc   : > { %p663_p7 = scmp.ne.s32.totalorder %s932_s8, %s662_s13  ;;  %p667_p12 = scmp.lt.u32.totalorder %s932_s8, %s986_s5 }
  0xdd   : > { %p668_p1 = scmp.lt.u32.totalorder %s666_s24, %s662_s13  ;;  %p670_p0 = scmp.lt.u32.totalorder %s662_s13, %s932_s8 }
  0xde   : > { %p664_p10 = pnand %p663_p7, %p1001_p2 }
  0xdf   : > { %p669_p8 = por %p668_p1, %p667_p12 }
  0xe0   : > { %p665_p6 = pneg %p664_p10 }
  0xe1   : > { %p671_p5 = por %p670_p0, %p669_p8 }
  0xe3   : > { %p672_p4 = pnand %p671_p5, %p665_p6 }
  0xe5   : > { %675 = shalt.err (!%p672_p4)
}
  0xe6   : > { %534 = dma.vmem_to_hbm [thread:$0]  (%p1001_p2), %s934_s11, 128, %s932_s8, %s365_s26  }
  0xe7 PF: > { %s391_s27 = sand.u32 1, %s714_s18   ;;  %p1002_p9 = scmp.ne.s32.totalorder %s994_s29, 0 }
  0xe8   : > { %p1003_p13 = scmp.ge.s32.totalorder %s734_s23, 2  ;;  %s392_s30 = scalar_lea.sflag [#allocation4], %s391_s27 }
  0xea   : > { %p545_p11 = pnand %p1003_p13, %p1002_p9 }
  0xec   : > { %709 = dma.done.wait (!%p545_p11), %s392_s30, 128  }
  0xed   : > { %711 = vsyncadd (!%p545_p11), %s392_s30, 4294967168  ;;  %s22_s23 = sadd.s32 1, %s734_s23   ;;  %s1004_s18 = smov %s718_s19 }
  0xee   : > { %p19_p3 = scmp.ge.s32.totalorder %s22_s23, 4   ;;  %s1005_s19 = smov %s722_s20 }
  0xef   : > { %s1006_s20 = smov %s862_s17  ;;  %s1007_s21 = smov %s730_s22 }
  0xf0   : > { %s1008_s22 = smov %s1010_s10  ;;  %21 = sbr.rel (!%p19_p3) target bundleno = 7 (0x7), region = 99 }
  0xf7   :  { %397 = vsyncpa [#allocation3], 1 }
  0xf8   :  { %399 = vsyncpa [#allocation3 + $0x1], 1 }
  0xf9   :  { %400 = vsyncpa [#allocation4], 1 }
  0xfa   :  { %402 = vsyncpa [#allocation4 + $0x1], 1 }
  0xfb   :  { %403 = vsyncpa [#allocation5], 1 }
  0xfc   :  { %405 = vsyncpa [#allocation5 + $0x1], 1 }

</bundles_post_ra>
